<compile_context>
chip_gen: v6e
topology: v6e:2x2x1
jax: 0.10.0
libtpu: 0.0.40
codegen_flags: <defaults>
</compile_context>

<pallas_src>
import jax
import jax.numpy as jnp
from jax.experimental import pallas as pl
from jax.experimental.pallas import tpu as pltpu


def _round_up(x, m):
    return (x + m - 1) // m * m


def _binary_softmax_kernel(x_ref, wd_ref, bd_ref, o_ref):
    # x_ref: (TB, D); wd_ref: (D, 2) with columns [w0 - w1, w1 - w0];
    # bd_ref: (1, 2) = [b0 - b1, b1 - b0]; o_ref: (TB, 2)
    x = x_ref[...]
    d = jnp.dot(x, wd_ref[...], preferred_element_type=jnp.float32)
    d = d + bd_ref[...].astype(jnp.float32)
    # softmax over 2 classes == sigmoid of pairwise logit differences:
    #   p0 = sigmoid(l0 - l1), p1 = sigmoid(l1 - l0); rows sum to 1.
    # No cross-lane reductions; saturates correctly for large |d|
    # (exp overflow -> inf -> 1/(1+inf) = 0).
    p = 1.0 / (1.0 + jnp.exp(-d))
    o_ref[...] = p.astype(o_ref.dtype)


def _softmax_kernel(x_ref, wt_ref, b_ref, o_ref):
    # General O path.  x_ref: (TB, D); wt_ref: (D, O) (pre-transposed in the
    # wrapper, MXU-native (K, N)); b_ref: (1, O); o_ref: (TB, O)
    logits = jnp.dot(x_ref[...], wt_ref[...], preferred_element_type=jnp.float32)
    logits = logits + b_ref[...].astype(jnp.float32)
    m = jnp.max(logits, axis=-1, keepdims=True)
    e = jnp.exp(logits - m)
    denom = jnp.sum(e, axis=-1, keepdims=True)
    # Exact divide so each row sums to 1 (pl.reciprocal(approx=True) would be
    # slightly faster but off by ~1e-3-1e-4 relative).
    o_ref[...] = (e / denom).astype(o_ref.dtype)


def logistic_regression_forward(x, weight, bias, *, batch_tile=8192):
    """softmax(x @ weight.T + bias, axis=-1).

    x:      (B, D) float
    weight: (O, D)  -- PyTorch nn.Linear layout
    bias:   (O,)
    """
    B, D = x.shape
    O = weight.shape[0]
    out_dtype = x.dtype
    itemsize = jnp.dtype(x.dtype).itemsize

    # Batch tile: multiple of 8 sublanes, large enough that per-step DMA
    # dwarfs the ~0.35us fixed step cost; capped so the double-buffered x
    # block stays within ~16 MiB even for large D (never binds at D=64).
    rows_cap = max(8, ((16 * 1024 * 1024) // (2 * D * itemsize)) // 8 * 8)
    TB = max(8, min(batch_tile, _round_up(B, 8), rows_cap))
    grid_n = pl.cdiv(B, TB)
    # If everything fits in one tile, split in two so the "parallel" batch axis
    # can shard across both TensorCores on v7x (one extra ~0.35us step elsewhere).
    if grid_n == 1 and B > 8:
        TB = _round_up(pl.cdiv(B, 2), 8)
        grid_n = pl.cdiv(B, TB)

    if O == 2:
        # Binary fast path: sigmoid-of-difference weights, built once per call.
        wt = jnp.stack([weight[0] - weight[1], weight[1] - weight[0]], axis=1)  # (D, 2)
        b2 = jnp.stack([bias[0] - bias[1], bias[1] - bias[0]]).reshape(1, 2)
        kernel = _binary_softmax_kernel
    else:
        wt = weight.T               # (D, O): one tiny XLA transpose per call
        b2 = bias.reshape(1, O)
        kernel = _softmax_kernel

    # VMEM: double-buffered x/out tiles + resident weight/bias, with headroom;
    # cap at half the physical VMEM (<= 32 MiB on v7x, <= 48 MiB on v5e/v6e).
    try:
        vmem_cap = pltpu.get_tpu_info().vmem_capacity_bytes
    except Exception:
        vmem_cap = 64 * 1024 * 1024          # conservative: v7x physical size
    budget = min(vmem_cap // 2, 48 * 1024 * 1024)
    vmem_est = (2 * TB * D + 2 * TB * O + D * O + O) * itemsize
    vmem_limit = int(min(max(4 * vmem_est, 16 * 1024 * 1024), budget))

    return pl.pallas_call(
        kernel,
        out_shape=jax.ShapeDtypeStruct((B, O), out_dtype),
        grid=(grid_n,),
        in_specs=[
            pl.BlockSpec((TB, D), lambda i: (i, 0)),   # x: streamed per batch tile
            pl.BlockSpec((D, O), lambda i: (0, 0)),    # weight: VMEM-resident
            pl.BlockSpec((1, O), lambda i: (0, 0)),    # bias:   VMEM-resident
        ],
        out_specs=pl.BlockSpec((TB, O), lambda i: (i, 0)),
        compiler_params=pltpu.CompilerParams(
            dimension_semantics=("parallel",),         # megacore on v7x
            vmem_limit_bytes=vmem_limit,
        ),
    )(x, wt, b2)


def _reference(x, weight, bias):
    return jax.nn.softmax(x @ weight.T + bias, axis=-1)


if __name__ == "__main__":
    input_dim, output_dim = 64, 2

    key = jax.random.PRNGKey(0)
    kx, kw, kb, kx2, kw3, kb3, kx3 = jax.random.split(key, 7)

    weight = jax.random.normal(kw, (output_dim, input_dim), dtype=jnp.float32) * 0.1
    bias = jax.random.normal(kb, (output_dim,), dtype=jnp.float32) * 0.1

    # Case 1: small batch, single tile, O == 2 sigmoid-specialized path.
    x = jax.random.normal(kx, (8, input_dim), dtype=jnp.float32)
    out = jax.block_until_ready(logistic_regression_forward(x, weight, bias))
    ref = _reference(x, weight, bias)
    assert out.shape == (8, output_dim)
    assert jnp.allclose(out, ref, atol=1e-3), "mismatch vs reference (case 1)"

    # Case 2: batch not a multiple of the tile (multi-step grid + masked ragged tail).
    x2 = jax.random.normal(kx2, (200, input_dim), dtype=jnp.float32)
    out2 = jax.block_until_ready(
        logistic_regression_forward(x2, weight, bias, batch_tile=64))
    ref2 = _reference(x2, weight, bias)
    assert out2.shape == (200, output_dim)
    assert jnp.allclose(out2, ref2, atol=1e-3), "mismatch vs reference (case 2)"

    # Case 3: general multi-class softmax path (O != 2), ragged tail + grid split.
    O3 = 5
    w3 = jax.random.normal(kw3, (O3, input_dim), dtype=jnp.float32) * 0.1
    b3 = jax.random.normal(kb3, (O3,), dtype=jnp.float32) * 0.1
    x3 = jax.random.normal(kx3, (100, input_dim), dtype=jnp.float32)
    out3 = jax.block_until_ready(logistic_regression_forward(x3, w3, b3))
    ref3 = _reference(x3, w3, b3)
    assert out3.shape == (100, O3)
    assert jnp.allclose(out3, ref3, atol=1e-3), "mismatch vs reference (case 3)"

    print("KERNEL_OK")
</pallas_src>

<mosaic_0001>
module attributes {stable_mosaic.version = 11 : i64} {
  func.func @_binary_softmax_kernel(%arg0: i32, %arg1: memref<8x64xf32, #tpu.memory_space<vmem>>, %arg2: memref<64x2xf32, #tpu.memory_space<vmem>>, %arg3: memref<1x2xf32, #tpu.memory_space<vmem>>, %arg4: memref<8x2xf32, #tpu.memory_space<vmem>>) attributes {dimension_semantics = [#tpu.dimension_semantics<parallel>], iteration_bounds = array<i64: 1>, scalar_prefetch = 0 : i64, scratch_operands = 0 : i64, tpu.core_type = #tpu.core_type<tc>, window_params = [{transform_indices = @transform_0, window_bounds = array<i64: 8, 64>}, {pipeline_mode = #tpu.pipeline_mode<synchronous>, transform_indices = @transform_1, window_bounds = array<i64: 64, 2>}, {pipeline_mode = #tpu.pipeline_mode<synchronous>, transform_indices = @transform_2, window_bounds = array<i64: 1, 2>}, {transform_indices = @transform_3, window_bounds = array<i64: 8, 2>}]} {
    %c0 = arith.constant 0 : index
    %c0_0 = arith.constant 0 : index
    %0 = vector.load %arg1[%c0, %c0_0] : memref<8x64xf32, #tpu.memory_space<vmem>>, vector<8x64xf32>
    %c0_1 = arith.constant 0 : index
    %c0_2 = arith.constant 0 : index
    %1 = vector.load %arg2[%c0_1, %c0_2] : memref<64x2xf32, #tpu.memory_space<vmem>>, vector<64x2xf32>
    %cst = arith.constant dense<0.000000e+00> : vector<8x2xf32>
    %2 = tpu.matmul %0, %1, %cst {dimension_numbers = #tpu.dot_dimension_numbers<[1], [0], [0], [1], [0, 0, 1, 1], [], []>} : vector<8x64xf32>, vector<64x2xf32>, vector<8x2xf32> -> vector<8x2xf32>
    %c0_3 = arith.constant 0 : index
    %c0_4 = arith.constant 0 : index
    %3 = vector.load %arg3[%c0_3, %c0_4] : memref<1x2xf32, #tpu.memory_space<vmem>>, vector<1x2xf32>
    %4 = vector.broadcast %3 : vector<1x2xf32> to vector<8x2xf32>
    %5 = arith.addf %2, %4 : vector<8x2xf32>
    %cst_5 = arith.constant 0.000000e+00 : f32
    %6 = vector.broadcast %cst_5 : f32 to vector<8x2xf32>
    %7 = arith.subf %6, %5 : vector<8x2xf32>
    %8 = math.exp %7 : vector<8x2xf32>
    %cst_6 = arith.constant 1.000000e+00 : f32
    %9 = vector.broadcast %cst_6 : f32 to vector<8x2xf32>
    %10 = arith.addf %9, %8 : vector<8x2xf32>
    %cst_7 = arith.constant 1.000000e+00 : f32
    %11 = vector.broadcast %cst_7 : f32 to vector<8x2xf32>
    %12 = arith.divf %11, %10 : vector<8x2xf32>
    %c0_8 = arith.constant 0 : index
    %c0_9 = arith.constant 0 : index
    %13 = vector.load %arg4[%c0_8, %c0_9] : memref<8x2xf32, #tpu.memory_space<vmem>>, vector<8x2xf32>
    tpu.vector_store %arg4[%c0_8, %c0_9], %12 {strides = array<i32>} : memref<8x2xf32, #tpu.memory_space<vmem>>, vector<8x2xf32>,
    return
  }
  func.func @transform_0(%arg0: i32) -> (i32, i32) {
    %c0_i32 = arith.constant 0 : i32
    %c0_i32_0 = arith.constant 0 : i32
    return %arg0, %c0_i32 : i32, i32
  }
  func.func @transform_1(%arg0: i32) -> (i32, i32) {
    %c0_i32 = arith.constant 0 : i32
    %c0_i32_0 = arith.constant 0 : i32
    %c0_i32_1 = arith.constant 0 : i32
    return %c0_i32, %c0_i32_0 : i32, i32
  }
  func.func @transform_2(%arg0: i32) -> (i32, i32) {
    %c0_i32 = arith.constant 0 : i32
    %c0_i32_0 = arith.constant 0 : i32
    %c0_i32_1 = arith.constant 0 : i32
    return %c0_i32, %c0_i32_0 : i32, i32
  }
  func.func @transform_3(%arg0: i32) -> (i32, i32) {
    %c0_i32 = arith.constant 0 : i32
    %c0_i32_0 = arith.constant 0 : i32
    return %arg0, %c0_i32 : i32, i32
  }
}

</mosaic_0001>

<bundles_post_ra>
// kernel: tpu_custom_call.1
= control target key start
LH: loop header
LB: loop body
LE: loop exit
PB: predicated region body
PF: predicated region fallthrough
CT: control target
= control target key end

     0   :  { %v152_v0 = vmov 0.0   ;;  %vm153_vm0 = vmmov 0   ;;  %vm30_vm1 = vcmask 523264   ;;  %vm110_vm2 = vcmask 15360   ;;  %s207_s1 = inlined_call_operand.vmem [shape: f32[64,2], index: 1, kind: input, shape index: {}]   ;;  %s208_s0 = inlined_call_operand.vmem [shape: f32[8,64], index: 0, kind: input, shape index: {}]   ;;  %s209_s2 = inlined_call_operand.vmem [shape: f32[1,2], index: 2, kind: input, shape index: {}]   ;;  %s210_s3 = inlined_call_operand.vmem [shape: f32[8,2], index: 3, kind: output, shape index: {}]  }
   0x1   :  { %127 = vmatprep.subr.mxu0 %v152_v0  ;;  %v22_v1 = vld [vmem:[%s207_s1 + $0x38] sm:$0xff]  ;;  %v21_v2 = vld [vmem:[%s207_s1 + $0x30] sm:$0xff]  ;;  %143 = vmatprep.mubr.msk.f32.mxu0 %vm153_vm0, %v152_v0  ;;  %v20_v3 = vld [vmem:[%s207_s1 + $0x28] sm:$0xff] }
   0x2   :  { %128 = vmatpush3.msra.mxu0 %v22_v1  ;;  %v19_v4 = vld [vmem:[%s207_s1 + $0x20] sm:$0xff]  ;;  %v18_v5 = vld [vmem:[%s207_s1 + $0x18] sm:$0xff]  ;;  %v17_v6 = vld [vmem:[%s207_s1 + $0x10] sm:$0xff] }
   0x3   :  { %129 = vmatprep.subr.mxu0 %v152_v0  ;;  %v16_v7 = vld [vmem:[%s207_s1 + $0x8] sm:$0xff]  ;;  %v15_v8 = vld [vmem:[%s207_s1] sm:$0xff] }
   0x4   :  { %130 = vmatpush3.msra.mxu0 %v21_v2  ;;  %v14_v9 = vld [vmem:[%s208_s0] sm:$0xff] }
   0x5   :  { %131 = vmatprep.subr.mxu0 %v152_v0  ;;  %v116_v10 = vld [vmem:[%s209_s2] ss:$0 sm:$0xff] }
   0x6   :  { %132 = vmatpush3.msra.mxu0 %v20_v3 }
   0x7   :  { %133 = vmatprep.subr.mxu0 %v152_v0 }
   0x8   :  { %134 = vmatpush3.msra.mxu0 %v19_v4 }
   0x9   :  { %135 = vmatprep.subr.mxu0 %v152_v0 }
   0xa   :  { %136 = vmatpush3.msra.mxu0 %v18_v5 }
   0xb   :  { %137 = vmatprep.subr.mxu0 %v152_v0 }
   0xc   :  { %138 = vmatpush3.msra.mxu0 %v17_v6 }
   0xd   :  { %139 = vmatprep.subr.mxu0 %v152_v0 }
   0xe   :  { %140 = vmatpush3.msra.mxu0 %v16_v7 }
   0xf   :  { %141 = vmatprep.subr.mxu0 %v152_v0 }
  0x10   :  { %142 = vmatpush3.msra.mxu0 %v15_v8 }
  0x11   :  { %144 = vmatmul.mubr.msk.f32.vlgmr.msra.gmra.mxu0 %vm30_vm1, %v14_v9 }
  0xd1   :  { %v100_v11 = vpop.f32.mrf.mxu0 }
  0xd2   :  { %v101_v12 = vadd.f32 %v116_v10, %v100_v11 }
  0xd3   :  { %v145_v13 = vpop.f32.mrf.mxu0 }
  0xd4   :  { %v104_v14 = vsub.f32 0.0, %v101_v12 }
  0xd6   :  { %v105_v15 = vmul.f32 1.442695, %v104_v14 }
  0xd8   :  { %148 = vpow2.f32 %v105_v15 }
  0xe5   :  { %v149_v16 = vpop.eup %148 }
  0xe6   :  { %v107_v17 = vadd.f32 1.0, %v149_v16 }
  0xe8   :  { %150 = vrcp.f32 %v107_v17 }
  0xf5   :  { %v151_v18 = vpop.eup %150 }
  0xf6   :  { %111 = vst.msk [vmem:[%s210_s3] sm:$0xff] %vm110_vm2, %v151_v18 }

</bundles_post_ra>
